<compile_context>
chip_gen: v7x
topology: tpu7x:2x2x1
jax: 0.10.0
libtpu: 0.0.40
codegen_flags: <defaults>
</compile_context>

<pallas_src>
import functools

import jax
import jax.numpy as jnp
from jax import lax
from jax.experimental import pallas as pl
from jax.experimental.pallas import tpu as pltpu
import numpy as np


def clip_loss_kernel(scale_ref, img_ref, txt_hbm_ref, out_ref,
                     txt_op_ref, col_ref, li_ref, dg_ref, dma_sem,
                     *, tn: int, ncol: int):
    # scale_ref   : SMEM (1,1) f32, already-exp'd logit scale (= max |logit|).
    # img_ref     : VMEM (tq, D) image-feature row tile for this grid step.
    # txt_hbm_ref : ANY/HBM (B, D) raw text features (manual one-shot DMA).
    # out_ref     : VMEM (1,1) f32 scalar loss (written on the last step).
    # scratch:
    #   txt_op_ref (B, D) op-dtype   resident L2-normalized text (MXU operand)
    #   col_ref    (ncol, 1, tn) f32 running column sums of exp(logits - M)
    #   li_ref     (1, 1) f32       running sum of (row_lse - diag)
    #   dg_ref     (1, 1) f32       running sum of diag
    #   dma_sem    DMA semaphore for the one-time text copy
    step = pl.program_id(0)
    nsteps = pl.num_programs(0)
    tq = img_ref.shape[0]
    B = txt_op_ref.shape[0]
    scale = scale_ref[0, 0]            # exp(logit_scale): also the static max M

    @pl.when(step == 0)
    def _init():
        # One-shot DMA of raw text into the resident scratch, then normalize
        # in place, chunk by chunk (bounds f32 temporaries to tn x D).
        cp = pltpu.make_async_copy(txt_hbm_ref, txt_op_ref, dma_sem)
        cp.start()
        cp.wait()

        def _norm_chunk(c, carry):
            r = pl.multiple_of(c * tn, tn)
            t = txt_op_ref[pl.ds(r, tn), :].astype(jnp.float32)
            inv = lax.rsqrt(jnp.sum(t * t, axis=1, keepdims=True))
            txt_op_ref[pl.ds(r, tn), :] = (t * inv).astype(txt_op_ref.dtype)
            return carry

        lax.fori_loop(0, ncol, _norm_chunk, 0)

        col_ref[...] = jnp.zeros_like(col_ref)
        li_ref[...] = jnp.zeros_like(li_ref)
        dg_ref[...] = jnp.zeros_like(dg_ref)

    # Normalize this image row tile in f32, folding logit_scale into the
    # (tq,1) broadcast multiply that already exists (no full-matrix scale).
    img = img_ref[...].astype(jnp.float32)
    img_sn = img * (scale * lax.rsqrt(jnp.sum(img * img, axis=1, keepdims=True)))
    img_op = img_sn.astype(txt_op_ref.dtype)          # MXU operand dtype

    # Diagonal logits[i, i] for this tile, read from the resident normalized
    # text (already normalized; no extra DMA, no renormalization).
    row0 = pl.multiple_of(step * tq, tq)
    txt_match = txt_op_ref[pl.ds(row0, tq), :].astype(jnp.float32)
    diag = jnp.sum(img_sn * txt_match, axis=1, keepdims=True)        # (tq, 1)

    # Column-tiled similarity.  Static max M = scale is valid because both
    # operands are unit-norm -> every logit is in [-scale, scale], so
    # exp(s - M) >= exp(-2*scale), comfortably inside f32 for log(1/0.07).
    ones_row = jnp.ones((1, tq), dtype=jnp.float32)

    def _col_chunk(c, row_sum):
        r = pl.multiple_of(c * tn, tn)
        txt_blk = txt_op_ref[pl.ds(r, tn), :]                        # (tn, D)
        s = lax.dot_general(img_op, txt_blk,
                            dimension_numbers=(((1,), (1,)), ((), ())),
                            preferred_element_type=jnp.float32)      # (tq, tn)
        e = jnp.exp(s - scale)                                       # (tq, tn)
        # Column partial sums on the MXU: (1,tq) @ (tq,tn) -> (1,tn).
        csum = lax.dot_general(ones_row, e,
                               dimension_numbers=(((1,), (0,)), ((), ())),
                               preferred_element_type=jnp.float32)
        col_ref[c] = col_ref[c] + csum
        return row_sum + jnp.sum(e, axis=1, keepdims=True)

    row_sum = lax.fori_loop(0, ncol, _col_chunk,
                            jnp.zeros((tq, 1), jnp.float32))

    lse_r = scale + jnp.log(row_sum)                                 # (tq, 1)
    li_ref[...] += jnp.sum(lse_r - diag, axis=0, keepdims=True)
    dg_ref[...] += jnp.sum(diag, axis=0, keepdims=True)

    @pl.when(step == nsteps - 1)
    def _finalize():
        lse_c = scale + jnp.log(col_ref[...])                        # (ncol,1,tn)
        col_tot = jnp.sum(jnp.sum(lse_c, axis=2, keepdims=True), axis=0)  # (1,1)
        out_ref[...] = (li_ref[...] + col_tot - dg_ref[...]) * (0.5 / B)


def _pick_row_tile(batch, dtype):
    # Largest MXU/sublane-friendly divisor of B.  bf16 packs 16 rows per vreg,
    # so require a multiple of 16 for bf16 (8 is fine for f32); 128/256 map
    # well onto the 128x128 (v5e) / 256x256 (v6e/v7x) MXU.
    if jnp.dtype(dtype) == jnp.dtype(jnp.bfloat16):
        candidates = (256, 128, 64, 32, 16)
    else:
        candidates = (256, 128, 64, 32, 16, 8)
    for t in candidates:
        if batch % t == 0:
            return t
    return batch


def _pick_col_tile(batch):
    # Lane-friendly chunk of the text/column axis; bounds the (tq, tn) f32
    # slabs so they never scale with the full batch.
    for t in (2048, 1024, 512, 256, 128):
        if batch % t == 0:
            return t
    return batch


def clip_loss(image_features, text_features, logit_scale_param):
    """image_features/text_features: (B, 1, D). Returns scalar f32 loss."""
    img = jnp.squeeze(image_features, axis=1)
    txt = jnp.squeeze(text_features, axis=1)
    B, D = img.shape
    op_dtype = img.dtype                 # MXU operand dtype (bf16 stays bf16)
    tq = _pick_row_tile(B, op_dtype)
    tn = _pick_col_tile(B)
    ncol = B // tn
    grid = (B // tq,)

    # exp(logit_scale): the logits' provable max-magnitude, used as the static
    # softmax max inside the kernel (operands are unit-norm).
    scale = jnp.exp(jnp.asarray(logit_scale_param, jnp.float32)).reshape(1, 1)

    op_bytes = jnp.dtype(op_dtype).itemsize
    vmem_need = (B * D * op_bytes            # resident normalized text (1x)
                 + 2 * tq * D * op_bytes     # double-buffered image tile
                 + 6 * tq * tn * 4           # s / e / temporaries per chunk
                 + B * 4 + tq * 4            # column sums + row sums
                 + (1 << 20))                # headroom
    # 64 MiB cap keeps the request valid on v7x; 32 MiB floor covers v5e's
    # 16 MiB default scoped limit.
    vmem_limit = int(min(max(2 * vmem_need, 32 * 1024 * 1024),
                         64 * 1024 * 1024))

    kernel = functools.partial(clip_loss_kernel, tn=tn, ncol=ncol)
    out = pl.pallas_call(
        kernel,
        out_shape=jax.ShapeDtypeStruct((1, 1), jnp.float32),
        grid=grid,
        in_specs=[
            pl.BlockSpec(memory_space=pltpu.MemorySpace.SMEM),  # exp(scale)
            pl.BlockSpec((tq, D), lambda i: (i, 0)),            # image row tile
            pl.BlockSpec(memory_space=pl.ANY),                  # text stays in HBM
        ],
        out_specs=pl.BlockSpec((1, 1), lambda i: (0, 0)),
        scratch_shapes=[
            pltpu.VMEM((B, D), op_dtype),            # resident normalized text
            pltpu.VMEM((ncol, 1, tn), jnp.float32),  # running column sums
            pltpu.VMEM((1, 1), jnp.float32),         # sum(lse_row - diag)
            pltpu.VMEM((1, 1), jnp.float32),         # sum(diag)
            pltpu.SemaphoreType.DMA,                 # one-shot text copy
        ],
        compiler_params=pltpu.CompilerParams(
            dimension_semantics=("arbitrary",),  # accumulators cross row tiles
            vmem_limit_bytes=vmem_limit),
    )(scale, img, txt)
    return out[0, 0]


def clip_loss_ref(image_features, text_features, logit_scale_param):
    """Pure-JAX reference mirroring the PyTorch forward."""
    img = jnp.squeeze(image_features, axis=1).astype(jnp.float32)
    txt = jnp.squeeze(text_features, axis=1).astype(jnp.float32)
    scale = jnp.exp(jnp.asarray(logit_scale_param, jnp.float32))
    img = img / jnp.linalg.norm(img, axis=1, keepdims=True)
    txt = txt / jnp.linalg.norm(txt, axis=1, keepdims=True)
    logits = scale * img @ txt.T
    B = logits.shape[0]
    labels = jnp.arange(B)
    lse_r = jax.nn.logsumexp(logits, axis=1)
    lse_c = jax.nn.logsumexp(logits, axis=0)
    diag = logits[labels, labels]
    loss_img = jnp.mean(lse_r - diag)
    loss_txt = jnp.mean(lse_c - diag)
    return (loss_img + loss_txt) / 2.0


if __name__ == "__main__":
    key = jax.random.PRNGKey(0)
    k1, k2 = jax.random.split(key)
    B, D = 8, 32
    # Inputs as the module expects: (batch, 1, hidden) before squeeze(1).
    image_features = jax.random.normal(k1, (B, 1, D), dtype=jnp.float32)
    text_features = jax.random.normal(k2, (B, 1, D), dtype=jnp.float32)
    # Deterministic parameter init, matching nn.Parameter(ones([]) * log(1/0.07)).
    logit_scale = jnp.float32(np.log(1.0 / 0.07))

    loss = jax.block_until_ready(
        clip_loss(image_features, text_features, logit_scale))
    ref = jax.block_until_ready(
        clip_loss_ref(image_features, text_features, logit_scale))
    np.testing.assert_allclose(np.asarray(loss), np.asarray(ref),
                               rtol=1e-4, atol=1e-4)

    print("KERNEL_OK")
</pallas_src>

<mosaic_0001>
module attributes {stable_mosaic.version = 11 : i64} {
  func.func @clip_loss_kernel(%arg0: i32, %arg1: memref<1x1xf32, #tpu.memory_space<smem>>, %arg2: memref<8x32xf32, #tpu.memory_space<vmem>>, %arg3: memref<8x32xf32, #tpu.memory_space<any>>, %arg4: memref<1x1xf32, #tpu.memory_space<vmem>>, %arg5: memref<8x32xf32, #tpu.memory_space<vmem>>, %arg6: memref<1x1x8xf32, #tpu.memory_space<vmem>>, %arg7: memref<1x1xf32, #tpu.memory_space<vmem>>, %arg8: memref<1x1xf32, #tpu.memory_space<vmem>>, %arg9: memref<!tpu.dma_semaphore, #tpu.memory_space<semaphore_mem>>) attributes {dimension_semantics = [#tpu.dimension_semantics<arbitrary>], iteration_bounds = array<i64: 1>, scalar_prefetch = 0 : i64, scratch_operands = 5 : i64, tpu.core_type = #tpu.core_type<tc>, window_params = [{transform_indices = @transform_0, window_bounds = array<i64: 1, 1>}, {transform_indices = @transform_1, window_bounds = array<i64: 8, 32>}, {}, {pipeline_mode = #tpu.pipeline_mode<synchronous>, transform_indices = @transform_3, window_bounds = array<i64: 1, 1>}]} {
    %c0 = arith.constant 0 : index
    %c0_0 = arith.constant 0 : index
    %0 = memref.load %arg1[%c0, %c0_0] : memref<1x1xf32, #tpu.memory_space<smem>>
    %c0_i32 = arith.constant 0 : i32
    %1 = arith.cmpi eq, %arg0, %c0_i32 : i32
    %2 = arith.extui %1 : i1 to i32
    %c0_i32_1 = arith.constant 0 : i32
    %3 = arith.cmpi ne, %2, %c0_i32_1 : i32
    scf.if %3 {
      tpu.enqueue_dma source(%arg3 : memref<8x32xf32, #tpu.memory_space<any>>) target(%arg5 : memref<8x32xf32, #tpu.memory_space<vmem>>) target_semaphore(%arg9 : memref<!tpu.dma_semaphore, #tpu.memory_space<semaphore_mem>>)
      tpu.wait_dma2 semaphore(%arg9 : memref<!tpu.dma_semaphore, #tpu.memory_space<semaphore_mem>>) src(%arg3 : memref<8x32xf32, #tpu.memory_space<any>>) dst(%arg5 : memref<8x32xf32, #tpu.memory_space<vmem>>)
      %c0_i32_30 = arith.constant 0 : i32
      %c8_i32_31 = arith.constant 8 : i32
      %59 = arith.muli %c0_i32_30, %c8_i32_31 : i32
      %60 = tpu.assume_multiple %59, 8 : i32
      %61 = arith.index_cast %60 : i32 to index
      %c0_32 = arith.constant 0 : index
      %62 = vector.load %arg5[%61, %c0_32] : memref<8x32xf32, #tpu.memory_space<vmem>>, vector<8x32xf32>
      %63 = arith.mulf %62, %62 : vector<8x32xf32>
      %cst_33 = arith.constant dense<0.000000e+00> : vector<8xf32>
      %64 = vector.multi_reduction <add>, %63, %cst_33 [1] : vector<8x32xf32> to vector<8xf32>
      %65 = vector.shape_cast %64 : vector<8xf32> to vector<8x1xf32>
      %66 = math.rsqrt %65 : vector<8x1xf32>
      %67 = vector.broadcast %66 : vector<8x1xf32> to vector<8x32xf32>
      %68 = arith.mulf %62, %67 : vector<8x32xf32>
      %69 = arith.index_cast %60 : i32 to index
      %c0_34 = arith.constant 0 : index
      %70 = vector.load %arg5[%69, %c0_34] : memref<8x32xf32, #tpu.memory_space<vmem>>, vector<8x32xf32>
      tpu.vector_store %arg5[%69, %c0_34], %68 {strides = array<i32>} : memref<8x32xf32, #tpu.memory_space<vmem>>, vector<8x32xf32>,
      %c1_i32_35 = arith.constant 1 : i32
      %cst_36 = arith.constant 0.000000e+00 : f32
      %71 = vector.broadcast %cst_36 : f32 to vector<1x1x8xf32>
      %c0_37 = arith.constant 0 : index
      %c0_38 = arith.constant 0 : index
      %c0_39 = arith.constant 0 : index
      %72 = vector.load %arg6[%c0_37, %c0_38, %c0_39] : memref<1x1x8xf32, #tpu.memory_space<vmem>>, vector<1x1x8xf32>
      tpu.vector_store %arg6[%c0_37, %c0_38, %c0_39], %71 {strides = array<i32>} : memref<1x1x8xf32, #tpu.memory_space<vmem>>, vector<1x1x8xf32>,
      %cst_40 = arith.constant 0.000000e+00 : f32
      %73 = vector.broadcast %cst_40 : f32 to vector<1x1xf32>
      %c0_41 = arith.constant 0 : index
      %c0_42 = arith.constant 0 : index
      %74 = vector.load %arg7[%c0_41, %c0_42] : memref<1x1xf32, #tpu.memory_space<vmem>>, vector<1x1xf32>
      tpu.vector_store %arg7[%c0_41, %c0_42], %73 {strides = array<i32>} : memref<1x1xf32, #tpu.memory_space<vmem>>, vector<1x1xf32>,
      %cst_43 = arith.constant 0.000000e+00 : f32
      %75 = vector.broadcast %cst_43 : f32 to vector<1x1xf32>
      %c0_44 = arith.constant 0 : index
      %c0_45 = arith.constant 0 : index
      %76 = vector.load %arg8[%c0_44, %c0_45] : memref<1x1xf32, #tpu.memory_space<vmem>>, vector<1x1xf32>
      tpu.vector_store %arg8[%c0_44, %c0_45], %75 {strides = array<i32>} : memref<1x1xf32, #tpu.memory_space<vmem>>, vector<1x1xf32>,
    } else {
    }
    %c0_2 = arith.constant 0 : index
    %c0_3 = arith.constant 0 : index
    %4 = vector.load %arg2[%c0_2, %c0_3] : memref<8x32xf32, #tpu.memory_space<vmem>>, vector<8x32xf32>
    %5 = arith.mulf %4, %4 : vector<8x32xf32>
    %cst = arith.constant dense<0.000000e+00> : vector<8xf32>
    %6 = vector.multi_reduction <add>, %5, %cst [1] : vector<8x32xf32> to vector<8xf32>
    %7 = vector.shape_cast %6 : vector<8xf32> to vector<8x1xf32>
    %8 = math.rsqrt %7 : vector<8x1xf32>
    %9 = vector.broadcast %0 : f32 to vector<8x1xf32>
    %10 = arith.mulf %9, %8 : vector<8x1xf32>
    %11 = vector.broadcast %10 : vector<8x1xf32> to vector<8x32xf32>
    %12 = arith.mulf %4, %11 : vector<8x32xf32>
    %c8_i32 = arith.constant 8 : i32
    %13 = arith.muli %arg0, %c8_i32 : i32
    %14 = tpu.assume_multiple %13, 8 : i32
    %15 = arith.index_cast %14 : i32 to index
    %c0_4 = arith.constant 0 : index
    %16 = vector.load %arg5[%15, %c0_4] : memref<8x32xf32, #tpu.memory_space<vmem>>, vector<8x32xf32>
    %17 = arith.mulf %12, %16 : vector<8x32xf32>
    %cst_5 = arith.constant dense<0.000000e+00> : vector<8xf32>
    %18 = vector.multi_reduction <add>, %17, %cst_5 [1] : vector<8x32xf32> to vector<8xf32>
    %19 = vector.shape_cast %18 : vector<8xf32> to vector<8x1xf32>
    %cst_6 = arith.constant 1.000000e+00 : f32
    %20 = vector.broadcast %cst_6 : f32 to vector<1x8xf32>
    %cst_7 = arith.constant 0.000000e+00 : f32
    %21 = vector.broadcast %cst_7 : f32 to vector<8x1xf32>
    %c0_i32_8 = arith.constant 0 : i32
    %c8_i32_9 = arith.constant 8 : i32
    %22 = arith.muli %c0_i32_8, %c8_i32_9 : i32
    %23 = tpu.assume_multiple %22, 8 : i32
    %24 = arith.index_cast %23 : i32 to index
    %c0_10 = arith.constant 0 : index
    %25 = vector.load %arg5[%24, %c0_10] : memref<8x32xf32, #tpu.memory_space<vmem>>, vector<8x32xf32>
    %cst_11 = arith.constant dense<0.000000e+00> : vector<8x8xf32>
    %26 = tpu.matmul %12, %25, %cst_11 {dimension_numbers = #tpu.dot_dimension_numbers<[1], [1], [0], [0], [0, 0, 1, 0], [], []>} : vector<8x32xf32>, vector<8x32xf32>, vector<8x8xf32> -> vector<8x8xf32>
    %27 = vector.broadcast %0 : f32 to vector<8x8xf32>
    %28 = arith.subf %26, %27 : vector<8x8xf32>
    %29 = math.exp %28 : vector<8x8xf32>
    %cst_12 = arith.constant dense<0.000000e+00> : vector<1x8xf32>
    %30 = tpu.matmul %20, %29, %cst_12 {dimension_numbers = #tpu.dot_dimension_numbers<[1], [0], [0], [1], [0, 0, 1, 1], [], []>} : vector<1x8xf32>, vector<8x8xf32>, vector<1x8xf32> -> vector<1x8xf32>
    %31 = arith.index_cast %c0_i32_8 : i32 to index
    %c0_13 = arith.constant 0 : index
    %c0_14 = arith.constant 0 : index
    %32 = vector.load %arg6[%31, %c0_13, %c0_14] : memref<1x1x8xf32, #tpu.memory_space<vmem>>, vector<1x1x8xf32>
    %33 = vector.shape_cast %32 : vector<1x1x8xf32> to vector<1x8xf32>
    %34 = arith.addf %33, %30 : vector<1x8xf32>
    %35 = arith.index_cast %c0_i32_8 : i32 to index
    %c0_15 = arith.constant 0 : index
    %c0_16 = arith.constant 0 : index
    %36 = vector.load %arg6[%35, %c0_15, %c0_16] : memref<1x1x8xf32, #tpu.memory_space<vmem>>, vector<1x1x8xf32>
    %37 = vector.shape_cast %36 : vector<1x1x8xf32> to vector<1x8xf32>
    %38 = vector.shape_cast %34 : vector<1x8xf32> to vector<1x1x8xf32>
    tpu.vector_store %arg6[%35, %c0_15, %c0_16], %38 {strides = array<i32>} : memref<1x1x8xf32, #tpu.memory_space<vmem>>, vector<1x1x8xf32>,
    %cst_17 = arith.constant dense<0.000000e+00> : vector<8xf32>
    %39 = vector.multi_reduction <add>, %29, %cst_17 [1] : vector<8x8xf32> to vector<8xf32>
    %40 = vector.shape_cast %39 : vector<8xf32> to vector<8x1xf32>
    %41 = arith.addf %21, %40 : vector<8x1xf32>
    %c1_i32 = arith.constant 1 : i32
    %42 = math.log %41 : vector<8x1xf32>
    %43 = vector.broadcast %0 : f32 to vector<8x1xf32>
    %44 = arith.addf %43, %42 : vector<8x1xf32>
    %c0_18 = arith.constant 0 : index
    %c0_19 = arith.constant 0 : index
    %45 = vector.load %arg7[%c0_18, %c0_19] : memref<1x1xf32, #tpu.memory_space<vmem>>, vector<1x1xf32>
    %46 = arith.subf %44, %19 : vector<8x1xf32>
    %cst_20 = arith.constant dense<0.000000e+00> : vector<1xf32>
    %47 = vector.multi_reduction <add>, %46, %cst_20 [0] : vector<8x1xf32> to vector<1xf32>
    %48 = vector.shape_cast %47 : vector<1xf32> to vector<1x1xf32>
    %49 = arith.addf %45, %48 : vector<1x1xf32>
    %c0_21 = arith.constant 0 : index
    %c0_22 = arith.constant 0 : index
    %50 = vector.load %arg7[%c0_21, %c0_22] : memref<1x1xf32, #tpu.memory_space<vmem>>, vector<1x1xf32>
    tpu.vector_store %arg7[%c0_21, %c0_22], %49 {strides = array<i32>} : memref<1x1xf32, #tpu.memory_space<vmem>>, vector<1x1xf32>,
    %c0_23 = arith.constant 0 : index
    %c0_24 = arith.constant 0 : index
    %51 = vector.load %arg8[%c0_23, %c0_24] : memref<1x1xf32, #tpu.memory_space<vmem>>, vector<1x1xf32>
    %cst_25 = arith.constant dense<0.000000e+00> : vector<1xf32>
    %52 = vector.multi_reduction <add>, %19, %cst_25 [0] : vector<8x1xf32> to vector<1xf32>
    %53 = vector.shape_cast %52 : vector<1xf32> to vector<1x1xf32>
    %54 = arith.addf %51, %53 : vector<1x1xf32>
    %c0_26 = arith.constant 0 : index
    %c0_27 = arith.constant 0 : index
    %55 = vector.load %arg8[%c0_26, %c0_27] : memref<1x1xf32, #tpu.memory_space<vmem>>, vector<1x1xf32>
    tpu.vector_store %arg8[%c0_26, %c0_27], %54 {strides = array<i32>} : memref<1x1xf32, #tpu.memory_space<vmem>>, vector<1x1xf32>,
    %c0_i32_28 = arith.constant 0 : i32
    %56 = arith.cmpi eq, %arg0, %c0_i32_28 : i32
    %57 = arith.extui %56 : i1 to i32
    %c0_i32_29 = arith.constant 0 : i32
    %58 = arith.cmpi ne, %57, %c0_i32_29 : i32
    scf.if %58 {
      %c0_30 = arith.constant 0 : index
      %c0_31 = arith.constant 0 : index
      %c0_32 = arith.constant 0 : index
      %59 = vector.load %arg6[%c0_30, %c0_31, %c0_32] : memref<1x1x8xf32, #tpu.memory_space<vmem>>, vector<1x1x8xf32>
      %60 = math.log %59 : vector<1x1x8xf32>
      %61 = vector.broadcast %0 : f32 to vector<1x1x8xf32>
      %62 = arith.addf %61, %60 : vector<1x1x8xf32>
      %cst_33 = arith.constant dense<0.000000e+00> : vector<1x1xf32>
      %63 = vector.multi_reduction <add>, %62, %cst_33 [2] : vector<1x1x8xf32> to vector<1x1xf32>
      %64 = vector.shape_cast %63 : vector<1x1xf32> to vector<1x1x1xf32>
      %cst_34 = arith.constant dense<0.000000e+00> : vector<1x1xf32>
      %65 = vector.multi_reduction <add>, %64, %cst_34 [0] : vector<1x1x1xf32> to vector<1x1xf32>
      %c0_35 = arith.constant 0 : index
      %c0_36 = arith.constant 0 : index
      %66 = vector.load %arg7[%c0_35, %c0_36] : memref<1x1xf32, #tpu.memory_space<vmem>>, vector<1x1xf32>
      %67 = arith.addf %66, %65 : vector<1x1xf32>
      %c0_37 = arith.constant 0 : index
      %c0_38 = arith.constant 0 : index
      %68 = vector.load %arg8[%c0_37, %c0_38] : memref<1x1xf32, #tpu.memory_space<vmem>>, vector<1x1xf32>
      %69 = arith.subf %67, %68 : vector<1x1xf32>
      %cst_39 = arith.constant 6.250000e-02 : f32
      %70 = vector.broadcast %cst_39 : f32 to vector<1x1xf32>
      %71 = arith.mulf %69, %70 : vector<1x1xf32>
      %c0_40 = arith.constant 0 : index
      %c0_41 = arith.constant 0 : index
      %72 = vector.load %arg4[%c0_40, %c0_41] : memref<1x1xf32, #tpu.memory_space<vmem>>, vector<1x1xf32>
      tpu.vector_store %arg4[%c0_40, %c0_41], %71 {strides = array<i32>} : memref<1x1xf32, #tpu.memory_space<vmem>>, vector<1x1xf32>,
    } else {
    }
    return
  }
  func.func @transform_0(%arg0: i32) -> (i32, i32) {
    %c0_i32 = arith.constant 0 : i32
    %c0_i32_0 = arith.constant 0 : i32
    %c0_i32_1 = arith.constant 0 : i32
    return %c0_i32, %c0_i32_0 : i32, i32
  }
  func.func @transform_1(%arg0: i32) -> (i32, i32) {
    %c0_i32 = arith.constant 0 : i32
    %c0_i32_0 = arith.constant 0 : i32
    return %arg0, %c0_i32 : i32, i32
  }
  func.func @transform_3(%arg0: i32) -> (i32, i32) {
    %c0_i32 = arith.constant 0 : i32
    %c0_i32_0 = arith.constant 0 : i32
    %c0_i32_1 = arith.constant 0 : i32
    return %c0_i32, %c0_i32_0 : i32, i32
  }
}

</mosaic_0001>

<bundles_post_ra>
// kernel: tpu_custom_call.1
= control target key start
LH: loop header
LB: loop body
LE: loop exit
PB: predicated region body
PF: predicated region fallthrough
CT: control target
= control target key end

     0   :  { %9 = vsyncpa [#allocation9], 0  ;;  %s484_s0 = inlined_call_operand.<no memory space> [shape: f32[1,1], index: 0, kind: input, shape index: {}]   ;;  %s485_s1 = inlined_call_operand.hbm [shape: f32[8,32], index: 1, kind: input, shape index: {}]   ;;  %s486_s2 = inlined_call_operand.hbm [shape: f32[8,32], index: 2, kind: input, shape index: {}]   ;;  %s487_s3 = inlined_call_operand.hbm [shape: f32[1,1], index: 3, kind: output, shape index: {}]  }
   0x1   :  { %10 = vsyncpa [#allocation10], 0  ;;  %s405_s12 = smov [#allocation8]   ;;  %s333_s16 = scalar_lea.hbm %s485_s1, 128 }
   0x2   :  { %s19_s13 = sshll.u32 %s405_s12, 4  ;;  %p334_p0 = scmp.ne.s32.totalorder %s485_s1, %s333_s16  ;;  %s20_s13 = int_to_ptr.vmem [resolvable:$true] %s19_s13 }
   0x3   :  { %p337_p1 = scmp.lt.u32.totalorder %s333_s16, %s485_s1 }
   0x5   :  { %p339_p2 = pnand %p337_p1, %p334_p0 }
   0x7   :  { %342 = shalt.err (!%p339_p2)
}
   0x8   :  { %s343_s21 = scalar_lea.vmem %s20_s13, 128  ;;  %p348_p4 = scmp.lt.s32.totalorder %s20_s13, %s20_s13 }
   0x9   :  { %p344_p3 = scmp.ne.s32.totalorder %s20_s13, %s343_s21  ;;  %p349_p5 = scmp.lt.s32.totalorder %s343_s21, %s343_s21 }
   0xb   :  { %p350_p6 = por %p349_p5, %p348_p4 }
   0xd   :  { %p351_p7 = pnand %p350_p6, %p344_p3 }
   0xf   :  { %354 = shalt.err (!%p351_p7)
}
  0x10   :  { %22 = dma.hbm_to_vmem [thread:$0]  %s485_s1, 128, %s20_s13, [#allocation9]  }
  0x11   :  { %399 = dma.done.wait [#allocation9], 128  }
  0x12   :  { %400 = vsyncadd [#allocation9], 4294967168  ;;  %s406_s24 = smov [#allocation2]   ;;  %s355_s28 = scalar_lea.hbm %s486_s2, 128 }
  0x13   :  { %s38_s25 = sshll.u32 %s406_s24, 4  ;;  %p356_p8 = scmp.ne.s32.totalorder %s486_s2, %s355_s28  ;;  %s39_s25 = int_to_ptr.vmem [resolvable:$true] %s38_s25 }
  0x14   :  { %p359_p9 = scmp.lt.u32.totalorder %s355_s28, %s486_s2 }
  0x16   :  { %p361_p10 = pnand %p359_p9, %p356_p8 }
  0x18   :  { %364 = shalt.err (!%p361_p10)  }
  0x19   :  { %s365_s1 = scalar_lea.vmem %s39_s25, 128  ;;  %p370_p12 = scmp.lt.s32.totalorder %s39_s25, %s39_s25 }
  0x1a   :  { %p366_p11 = scmp.ne.s32.totalorder %s39_s25, %s365_s1  ;;  %p371_p13 = scmp.lt.s32.totalorder %s365_s1, %s365_s1 }
  0x1c   :  { %p372_p0 = por %p371_p13, %p370_p12 }
  0x1e   :  { %p373_p1 = pnand %p372_p0, %p366_p11 }
  0x20   :  { %376 = shalt.err (!%p373_p1)  }
  0x21   :  { %41 = dma.hbm_to_vmem [thread:$0]  %s486_s2, 128, %s39_s25, [#allocation6] }
  0x22   :  { %401 = dma.done.wait [#allocation6], 128 }
  0x23   :  { %402 = vsyncadd [#allocation6], 4294967168  ;;  %v45_v0 = vld [vmem:[#allocation2] sm:$0xff]  ;;  %vm47_vm0 = vcmask 261120   ;;  %v59_v1 = vld [vmem:[#allocation8] sm:$0xff]  ;;  %v407_v6 = vmov 0.0   ;;  %v66_v11 = vstv %s484_s0 }
  0x24   :  { %v46_v2 = vmul.f32 %v45_v0, %v45_v0  ;;  %v60_v3 = vmul.f32 %v59_v1, %v59_v1  ;;  %307 = vmatprep.subr.mxu0 %v407_v6  ;;  %312 = vmatprep.subr.mxu1 %v407_v6  ;;  %vm408_vm1 = vmmov 0   ;;  %vm156_vm2 = vcmask 64512   ;;  %s410_s0 = smov [#allocation11]  }
  0x25   :  { %309 = vmatprep.mubr.msk.f32.mxu0 %vm408_vm1, %v407_v6  ;;  %314 = vmatprep.mubr.msk.f32.mxu1 %vm408_vm1, %v407_v6  ;;  %v409_v23 = vmov 1.0   ;;  %vm56_vm3 = vcmask 0   ;;  %vm54_vm4 = vcmask 57344   ;;  %s284_s9 = sshll.u32 %s410_s0, 4  ;;  %s285_s9 = int_to_ptr.vmem [resolvable:$true] %s284_s9 }
  0x26   :  { %v48_v4 = vsel %vm47_vm0, %v46_v2, 0.0  ;;  %v62_v5 = vsel %vm47_vm0, %v60_v3, 0.0  ;;  %57 = vst.msk [vmem:[#allocation4] sm:$0x1] %vm56_vm3, %v407_v6  ;;  %58 = vst.msk [vmem:[#allocation5] sm:$0x1] %vm56_vm3, %v407_v6  ;;  %p382_p3 = scmp.lt.s32.totalorder %s285_s9, %s285_s9 }
  0x27   :  { %49 = vadd.xlane.f32.xlu0 %v48_v4  ;;  %55 = vst.msk [vmem:[#allocation3] sm:$0x1] %vm54_vm4, %v407_v6  ;;  %s377_s10 = scalar_lea.vmem %s285_s9, 16  ;;  %s381_s11 = scalar_lea.vmem %s285_s9, 32 }
  0x28   :  { %p378_p2 = scmp.ne.s32.totalorder %s285_s9, %s377_s10  ;;  %p383_p4 = scmp.lt.s32.totalorder %s381_s11, %s377_s10 }
  0x2a   :  { %p384_p5 = por %p383_p4, %p382_p3 }
  0x2b   :  { %63 = vadd.xlane.f32.xlu0 %v62_v5 }
  0x2c   :  { %p385_p6 = pnand %p384_p5, %p378_p2 }
  0x2d   :  { %v252_v35 = vld [vmem:[#allocation5] sm:$0x1]  ;;  %v241_v44 = vld [vmem:[#allocation4] sm:$0x1] }
  0x2e   :  { %v230_v47 = vld [vmem:[#allocation3] sm:$0x1] }
  0xb4   :  { %v50_v7 = vpop.xlane.xlu0 %49 }
  0xb5   :  { %323 = vrsqrt.f32 %v50_v7 }
  0xb8   :  { %v64_v8 = vpop.xlane.xlu0 %63 }
  0xb9   :  { %325 = vrsqrt.f32 %v64_v8 }
  0xbf   :  { %v324_v9 = vpop.eup %323 }
  0xc0   :  { %v52_v10 = vmul.f32 %v324_v9, %v45_v0 }
  0xc2   :  { %53 = vst.msk [vmem:[#allocation2] sm:$0xff] %vm47_vm0, %v52_v10 }
  0xc3   :  { %v326_v12 = vpop.eup %325 }
  0xc4   :  { %v67_v13 = vmul.f32 %v326_v12, %v66_v11 }
  0xc6   :  { %v68_v14 = vmul.f32 %v67_v13, %v59_v1 }
  0xc9   :  { %v76_v15 = vld [vmem:[#allocation2] sm:$0xff] }
  0xca   :  { %308 = vmatpush3.xpose.msk.msra.mxu0 %vm47_vm0, %v76_v15  ;;  %v72_v16 = vmul.f32 %v76_v15, %v68_v14 }
  0xcc   :  { %v73_v24 = vsel %vm47_vm0, %v72_v16, 0.0 }
  0xcd   :  { %310 = vmatmul.mubr.msk.f32.vlgmr.msra.gmra.mrb[0].mxu0 %vm47_vm0, %v68_v14 }
 0x1a0   :  { %v149_v17 = vpop.f32.mrb[0].mxu0 }
 0x1a1   :  { %v153_v18 = vsub.f32 %v149_v17, %v66_v11  ;;  %v311_v19 = vpop.f32.mrb[1].mxu0 }
 0x1a3   :  { %v154_v20 = vmul.f32 1.442695, %v153_v18 }
 0x1a5   :  { %327 = vpow2.f32 %v154_v20 }
 0x1af   :  { %v328_v21 = vpop.eup %327 }
 0x1b0   :  { %313 = vmatpush3.msra.mxu1 %v328_v21  ;;  %v234_v22 = vsel %vm156_vm2, %v328_v21, 0.0 }
 0x1b1   :  { %235 = vadd.xlane.f32.xlu1 %v234_v22  ;;  %315 = vmatmul.mubr.msk.f32.vlgmr.msra.gmra.mrb[0].mxu1 %vm156_vm2, %v409_v23 }
 0x1b5   :  { %74 = vadd.xlane.f32.xlu1 %v73_v24 }
 0x23e   :  { %v236_v25 = vpop.xlane.xlu1 %235 }
 0x23f   :  { %329 = vlog2.f32 %v236_v25 }
 0x242   :  { %v75_v26 = vpop.xlane.xlu1 %74 }
 0x243   :  { %v253_v27 = vrot.slane %v75_v26, 4 }
 0x245   :  { %v254_v28 = vadd.f32 %v253_v27, %v75_v26 }
 0x247   :  { %v255_v29 = vrot.slane %v254_v28, 2 }
 0x249   :  { %v330_v30 = vpop.eup %329  ;;  %v256_v31 = vadd.f32 %v255_v29, %v254_v28 }
 0x24a   :  { %v239_v32 = vmul.f32 0.6931472, %v330_v30 }
 0x24b   :  { %v257_v33 = vrot.slane %v256_v31, 1 }
 0x24c   :  { %v240_v34 = vadd.f32 %v239_v32, %v66_v11 }
 0x24d   :  { %v258_v36 = vadd.f32 %v257_v33, %v256_v31 }
 0x24e   :  { %v242_v37 = vsub.f32 %v240_v34, %v75_v26 }
 0x24f   :  { %v259_v38 = vadd.f32 %v258_v36, %v252_v35 }
 0x250   :  { %v243_v39 = vrot.slane %v242_v37, 4 }
 0x251   :  { %260 = vst.msk [vmem:[#allocation5] sm:$0x1] %vm56_vm3, %v259_v38 }
 0x252   :  { %v244_v40 = vadd.f32 %v243_v39, %v242_v37 }
 0x254   :  { %v245_v41 = vrot.slane %v244_v40, 2 }
 0x256   :  { %v246_v42 = vadd.f32 %v245_v41, %v244_v40 }
 0x258   :  { %v247_v43 = vrot.slane %v246_v42, 1  ;;  %v274_v59 = vld [vmem:[#allocation5] sm:$0x1] }
 0x25a   :  { %v248_v45 = vadd.f32 %v247_v43, %v246_v42 }
 0x25c   :  { %v249_v46 = vadd.f32 %v248_v45, %v241_v44 }
 0x25e   :  { %251 = vst.msk [vmem:[#allocation4] sm:$0x1] %vm56_vm3, %v249_v46 }
 0x265   :  { %v272_v57 = vld [vmem:[#allocation4] sm:$0x1] }
 0x284   :  { %v226_v48 = vpop.f32.mrb[0].mxu1 }
 0x285   :  { %v231_v49 = vadd.f32 %v230_v47, %v226_v48  ;;  %v316_v50 = vpop.f32.mrb[1].mxu1 }
 0x287   :  { %233 = vst.msk [vmem:[#allocation3] sm:$0x1] %vm54_vm4, %v231_v49 }
 0x28e   :  { %v264_v51 = vld [vmem:[#allocation3] sm:$0x1] }
 0x28f   :  { %331 = vlog2.f32 %v264_v51 }
 0x299   :  { %v332_v52 = vpop.eup %331 }
 0x29a   :  { %v266_v53 = vmul.f32 0.6931472, %v332_v52 }
 0x29c   :  { %v267_v54 = vadd.f32 %v266_v53, %v66_v11 }
 0x29e   :  { %v268_v55 = vsel %vm54_vm4, %v267_v54, 0.0 }
 0x29f   :  { %269 = vadd.xlane.f32.xlu0 %v268_v55 }
 0x32c   :  { %v270_v56 = vpop.xlane.xlu0 %269 }
 0x32d   :  { %v273_v58 = vadd.f32 %v272_v57, %v270_v56 }
 0x32f   :  { %v275_v60 = vsub.f32 %v273_v58, %v274_v59 }
 0x331   :  { %v276_v61 = vmul.f32 0.0625, %v275_v60 }
 0x333   :  { %277 = vst.msk [vmem:[#allocation11] sm:$0x1] %vm56_vm3, %v276_v61 }
 0x334   :  { %388 = shalt.err (!%p385_p6)
}
 0x335   :  { %s389_s14 = scalar_lea.hbm %s487_s3, 16 }
 0x336   :  { %p390_p7 = scmp.ne.s32.totalorder %s487_s3, %s389_s14  ;;  %p393_p8 = scmp.lt.u32.totalorder %s389_s14, %s487_s3 }
 0x338   :  { %p395_p9 = pnand %p393_p8, %p390_p7 }
 0x33a   :  { %398 = shalt.err (!%p395_p9)
}
 0x33b   :  { %287 = dma.vmem_to_hbm [thread:$0]  %s285_s9, 16, %s487_s3, [#allocation10]  }
 0x33c   :  { %403 = dma.done.wait [#allocation10], 16  }
 0x33d   :  { %404 = vsyncadd [#allocation10], 4294967280 }
 0x33e   :  { %291 = vsyncpa [#allocation9], 1 }
 0x33f   :  { %292 = vsyncpa [#allocation10], 1 }
 0x340   :  { %293 = vsyncmov [#allocation6] }
 0x343   :  { %s294_s21 = vpop.sfrf %293 }
 0x344   :  { %p302_p10 = scmp.ne.s32.totalorder %s294_s21, 0 }
 0x346   :  { %298 = shalt.err (%p302_p10)  }

</bundles_post_ra>
